<compile_context>
chip_gen: v7x
topology: tpu7x:2x2x1
jax: 0.10.0
libtpu: 0.0.40
codegen_flags: <defaults>
</compile_context>

<pallas_src>
import functools

import jax
import jax.numpy as jnp
from jax.experimental import pallas as pl
from jax.experimental.pallas import tpu as pltpu

_LANE = 128


def _round_up(x, m):
    return (x + m - 1) // m * m


def _discrete_actor_kernel(obs_ref, w1_ref, b1_ref, w2_ref, b2_ref,
                           w3_ref, b3_ref,
                           out_ref, amax_ref, *, a_pad):
    # MLP trunk: bf16 matmuls on the MXU, f32 accumulation + f32 elementwise.
    x = obs_ref[...].astype(jnp.bfloat16)
    h = jnp.dot(x, w1_ref[...], preferred_element_type=jnp.float32) + b1_ref[...]
    h = jnp.maximum(h, 0.0)
    h = jnp.dot(h.astype(jnp.bfloat16), w2_ref[...],
                preferred_element_type=jnp.float32) + b2_ref[...]
    h = jnp.maximum(h, 0.0)
    logits = jnp.dot(h.astype(jnp.bfloat16), w3_ref[...],
                     preferred_element_type=jnp.float32) + b3_ref[...]
    # Padded action lanes carry b3 = -1e30 -> exp underflows to 0, so the
    # softmax below is exact over the real action lanes without any masking.

    # Categorical normalization (log_softmax / softmax), reusing the exp.
    m = jnp.max(logits, axis=-1, keepdims=True)          # XLU reduce
    e = jnp.exp(logits - m)                               # EUP
    s = jnp.sum(e, axis=-1, keepdims=True)                # XLU reduce
    logp = logits - (m + jnp.log(s))
    probs = e / s                                         # exact divide (keeps sum==1 tight)

    # Greedy action (exploit): smallest lane index attaining the row max.
    lane = jax.lax.broadcasted_iota(jnp.int32, logits.shape, 1)
    cand = jnp.where(logits == m, lane, a_pad)
    amax_ref[...] = jnp.min(cand, axis=-1, keepdims=True)

    # Packed, lane-dense output slab: [logits | logp | probs], each 128-aligned.
    out_ref[:, 0:a_pad] = logits
    out_ref[:, a_pad:2 * a_pad] = logp
    out_ref[:, 2 * a_pad:3 * a_pad] = probs


def discrete_actor_forward(obs, params, action_dim, *, tile_b=512):
    """Returns (logits, log_probs, probs, greedy_action) of the Categorical policy."""
    w1, b1, w2, b2, w3, b3 = params
    B, obs_dim = obs.shape
    a_pad = w3.shape[1]
    assert a_pad % _LANE == 0

    # Batch tiling: big tiles when the batch is big, clamp for tiny batches.
    tile_b = min(tile_b, _round_up(B, 8))
    b_pad = _round_up(B, tile_b)
    if b_pad != B:
        obs = jnp.pad(obs, ((0, b_pad - B), (0, 0)))
    grid = (b_pad // tile_b,)

    def resident(a):
        # Constant index_map -> DMA'd once, stays resident in VMEM across the grid.
        return pl.BlockSpec(a.shape, lambda i: (0, 0))

    kernel = functools.partial(_discrete_actor_kernel, a_pad=a_pad)

    slab, amax = pl.pallas_call(
        kernel,
        grid=grid,
        in_specs=[
            pl.BlockSpec((tile_b, obs_dim), lambda i: (i, 0)),  # streamed
            resident(w1), resident(b1),
            resident(w2), resident(b2),
            resident(w3), resident(b3),
        ],
        out_specs=(
            pl.BlockSpec((tile_b, 3 * a_pad), lambda i: (i, 0)),  # packed slab
            pl.BlockSpec((tile_b, 1), lambda i: (i, 0)),          # greedy action
        ),
        out_shape=(
            jax.ShapeDtypeStruct((b_pad, 3 * a_pad), jnp.float32),
            jax.ShapeDtypeStruct((b_pad, 1), jnp.int32),
        ),
        compiler_params=pltpu.CompilerParams(
            dimension_semantics=("parallel",)),  # megacore split on v7x
    )(obs, w1, b1, w2, b2, w3, b3)

    logits = slab[:B, 0:action_dim]
    log_probs = slab[:B, a_pad:a_pad + action_dim]
    probs = slab[:B, 2 * a_pad:2 * a_pad + action_dim]
    greedy = amax[:B, 0]
    return logits, log_probs, probs, greedy


def init_params(key, obs_dim, action_dim, list_hidden_dims):
    """Orthogonal W, zero b (mirrors weight_init), stored pre-transposed as
    (in_dim, out_dim) and padded so hidden/action dims are multiples of 128.

    Padding is exact: padded weight rows/cols are zero; padded b3 lanes are
    -1e30 so padded logits never participate in softmax/argmax. Weights are
    stored bf16 (halves resident VMEM + DMA), biases f32.
    """
    dims = [obs_dim] + list(list_hidden_dims) + [action_dim]
    padded = [obs_dim] + [_round_up(d, _LANE) for d in dims[1:]]
    params = []
    ortho = jax.nn.initializers.orthogonal()
    n_layers = len(dims) - 1
    for i, (din, dout) in enumerate(zip(dims[:-1], dims[1:])):
        key, sub = jax.random.split(key)
        w = ortho(sub, (din, dout), jnp.float32)
        w_pad = jnp.zeros((padded[i], padded[i + 1]), jnp.float32)
        w_pad = w_pad.at[:din, :dout].set(w)
        fill = -1e30 if i == n_layers - 1 else 0.0
        b_pad = jnp.full((1, padded[i + 1]), fill, jnp.float32)
        b_pad = b_pad.at[:, :dout].set(0.0)
        params.extend([w_pad.astype(jnp.bfloat16), b_pad])
    return tuple(params)


def _reference_forward(obs, params, action_dim):
    """Pure-JAX reference with the same bf16-matmul / f32-elementwise recipe."""
    w1, b1, w2, b2, w3, b3 = params
    h = jnp.maximum(
        jnp.dot(obs.astype(jnp.bfloat16), w1, preferred_element_type=jnp.float32) + b1, 0.0)
    h = jnp.maximum(
        jnp.dot(h.astype(jnp.bfloat16), w2, preferred_element_type=jnp.float32) + b2, 0.0)
    logits = jnp.dot(h.astype(jnp.bfloat16), w3,
                     preferred_element_type=jnp.float32) + b3
    logits = logits[:, :action_dim]
    logp = jax.nn.log_softmax(logits, axis=-1)
    return logits, logp, jnp.exp(logp)


if __name__ == "__main__":
    key = jax.random.PRNGKey(0)
    B, OBS_DIM, ACTION_DIM = 2, 16, 8
    HIDDEN = [32, 32]

    k_obs, k_params, k_big = jax.random.split(key, 3)
    obs = jax.random.normal(k_obs, (B, OBS_DIM), dtype=jnp.float32)
    params = init_params(k_params, OBS_DIM, ACTION_DIM, HIDDEN)

    logits, log_probs, probs, greedy = jax.block_until_ready(
        discrete_actor_forward(obs, params, ACTION_DIM))

    ref_logits, ref_logp, ref_probs = _reference_forward(obs, params, ACTION_DIM)
    assert jnp.allclose(logits, ref_logits, atol=1e-4, rtol=1e-4)
    assert jnp.allclose(log_probs, ref_logp, atol=1e-4, rtol=1e-4)
    assert jnp.allclose(probs, ref_probs, atol=1e-4, rtol=1e-4)
    assert jnp.allclose(jnp.sum(probs, axis=-1), 1.0, atol=1e-5)
    assert jnp.array_equal(greedy, jnp.argmax(logits, axis=-1))

    # Also exercise the multi-block / padded-batch path (what the grid is for).
    obs_big = jax.random.normal(k_big, (1000, OBS_DIM), dtype=jnp.float32)
    lg, lp, pr, gr = jax.block_until_ready(
        discrete_actor_forward(obs_big, params, ACTION_DIM))
    rlg, rlp, rpr = _reference_forward(obs_big, params, ACTION_DIM)
    assert jnp.allclose(lg, rlg, atol=1e-4, rtol=1e-4)
    assert jnp.allclose(lp, rlp, atol=1e-4, rtol=1e-4)
    assert jnp.allclose(pr, rpr, atol=1e-4, rtol=1e-4)
    assert jnp.allclose(jnp.sum(pr, axis=-1), 1.0, atol=1e-5)
    assert jnp.array_equal(gr, jnp.argmax(lg, axis=-1))

    # TODO(synk): Categorical .sample() (stochastic draw) stays outside the
    # kernel — use jax.random.categorical on the returned logits.
    print("KERNEL_OK")
</pallas_src>

<mosaic_0001>
module attributes {stable_mosaic.version = 11 : i64} {
  func.func @_discrete_actor_kernel(%arg0: i32, %arg1: memref<8x16xf32, #tpu.memory_space<vmem>>, %arg2: memref<16x128xbf16, #tpu.memory_space<vmem>>, %arg3: memref<1x128xf32, #tpu.memory_space<vmem>>, %arg4: memref<128x128xbf16, #tpu.memory_space<vmem>>, %arg5: memref<1x128xf32, #tpu.memory_space<vmem>>, %arg6: memref<128x128xbf16, #tpu.memory_space<vmem>>, %arg7: memref<1x128xf32, #tpu.memory_space<vmem>>, %arg8: memref<8x384xf32, #tpu.memory_space<vmem>>, %arg9: memref<8x1xi32, #tpu.memory_space<vmem>>) attributes {dimension_semantics = [#tpu.dimension_semantics<parallel>], iteration_bounds = array<i64: 1>, scalar_prefetch = 0 : i64, scratch_operands = 0 : i64, tpu.core_type = #tpu.core_type<tc>, window_params = [{transform_indices = @transform_0, window_bounds = array<i64: 8, 16>}, {pipeline_mode = #tpu.pipeline_mode<synchronous>, transform_indices = @transform_1, window_bounds = array<i64: 16, 128>}, {pipeline_mode = #tpu.pipeline_mode<synchronous>, transform_indices = @transform_2, window_bounds = array<i64: 1, 128>}, {pipeline_mode = #tpu.pipeline_mode<synchronous>, transform_indices = @transform_3, window_bounds = array<i64: 128, 128>}, {pipeline_mode = #tpu.pipeline_mode<synchronous>, transform_indices = @transform_4, window_bounds = array<i64: 1, 128>}, {pipeline_mode = #tpu.pipeline_mode<synchronous>, transform_indices = @transform_5, window_bounds = array<i64: 128, 128>}, {pipeline_mode = #tpu.pipeline_mode<synchronous>, transform_indices = @transform_6, window_bounds = array<i64: 1, 128>}, {transform_indices = @transform_7, window_bounds = array<i64: 8, 384>}, {transform_indices = @transform_8, window_bounds = array<i64: 8, 1>}]} {
    %c0 = arith.constant 0 : index
    %c0_0 = arith.constant 0 : index
    %0 = vector.load %arg1[%c0, %c0_0] : memref<8x16xf32, #tpu.memory_space<vmem>>, vector<8x16xf32>
    %1 = arith.truncf %0 : vector<8x16xf32> to vector<8x16xbf16>
    %c0_1 = arith.constant 0 : index
    %c0_2 = arith.constant 0 : index
    %2 = vector.load %arg2[%c0_1, %c0_2] : memref<16x128xbf16, #tpu.memory_space<vmem>>, vector<16x128xbf16>
    %cst = arith.constant dense<0.000000e+00> : vector<8x128xf32>
    %3 = tpu.matmul %1, %2, %cst {dimension_numbers = #tpu.dot_dimension_numbers<[1], [0], [0], [1], [0, 0, 1, 1], [], []>} : vector<8x16xbf16>, vector<16x128xbf16>, vector<8x128xf32> -> vector<8x128xf32>
    %c0_3 = arith.constant 0 : index
    %c0_4 = arith.constant 0 : index
    %4 = vector.load %arg3[%c0_3, %c0_4] : memref<1x128xf32, #tpu.memory_space<vmem>>, vector<1x128xf32>
    %5 = vector.broadcast %4 : vector<1x128xf32> to vector<8x128xf32>
    %6 = arith.addf %3, %5 : vector<8x128xf32>
    %cst_5 = arith.constant 0.000000e+00 : f32
    %7 = vector.broadcast %cst_5 : f32 to vector<8x128xf32>
    %8 = arith.maximumf %6, %7 : vector<8x128xf32>
    %9 = arith.truncf %8 : vector<8x128xf32> to vector<8x128xbf16>
    %c0_6 = arith.constant 0 : index
    %c0_7 = arith.constant 0 : index
    %10 = vector.load %arg4[%c0_6, %c0_7] : memref<128x128xbf16, #tpu.memory_space<vmem>>, vector<128x128xbf16>
    %cst_8 = arith.constant dense<0.000000e+00> : vector<8x128xf32>
    %11 = tpu.matmul %9, %10, %cst_8 {dimension_numbers = #tpu.dot_dimension_numbers<[1], [0], [0], [1], [0, 0, 1, 1], [], []>} : vector<8x128xbf16>, vector<128x128xbf16>, vector<8x128xf32> -> vector<8x128xf32>
    %c0_9 = arith.constant 0 : index
    %c0_10 = arith.constant 0 : index
    %12 = vector.load %arg5[%c0_9, %c0_10] : memref<1x128xf32, #tpu.memory_space<vmem>>, vector<1x128xf32>
    %13 = vector.broadcast %12 : vector<1x128xf32> to vector<8x128xf32>
    %14 = arith.addf %11, %13 : vector<8x128xf32>
    %cst_11 = arith.constant 0.000000e+00 : f32
    %15 = vector.broadcast %cst_11 : f32 to vector<8x128xf32>
    %16 = arith.maximumf %14, %15 : vector<8x128xf32>
    %17 = arith.truncf %16 : vector<8x128xf32> to vector<8x128xbf16>
    %c0_12 = arith.constant 0 : index
    %c0_13 = arith.constant 0 : index
    %18 = vector.load %arg6[%c0_12, %c0_13] : memref<128x128xbf16, #tpu.memory_space<vmem>>, vector<128x128xbf16>
    %cst_14 = arith.constant dense<0.000000e+00> : vector<8x128xf32>
    %19 = tpu.matmul %17, %18, %cst_14 {dimension_numbers = #tpu.dot_dimension_numbers<[1], [0], [0], [1], [0, 0, 1, 1], [], []>} : vector<8x128xbf16>, vector<128x128xbf16>, vector<8x128xf32> -> vector<8x128xf32>
    %c0_15 = arith.constant 0 : index
    %c0_16 = arith.constant 0 : index
    %20 = vector.load %arg7[%c0_15, %c0_16] : memref<1x128xf32, #tpu.memory_space<vmem>>, vector<1x128xf32>
    %21 = vector.broadcast %20 : vector<1x128xf32> to vector<8x128xf32>
    %22 = arith.addf %19, %21 : vector<8x128xf32>
    %cst_17 = arith.constant dense<0xFF800000> : vector<8xf32>
    %23 = vector.multi_reduction <maximumf>, %22, %cst_17 [1] : vector<8x128xf32> to vector<8xf32>
    %24 = vector.shape_cast %23 : vector<8xf32> to vector<8x1xf32>
    %25 = vector.broadcast %24 : vector<8x1xf32> to vector<8x128xf32>
    %26 = arith.subf %22, %25 : vector<8x128xf32>
    %27 = math.exp %26 : vector<8x128xf32>
    %cst_18 = arith.constant dense<0.000000e+00> : vector<8xf32>
    %28 = vector.multi_reduction <add>, %27, %cst_18 [1] : vector<8x128xf32> to vector<8xf32>
    %29 = vector.shape_cast %28 : vector<8xf32> to vector<8x1xf32>
    %30 = math.log %29 : vector<8x1xf32>
    %31 = arith.addf %24, %30 : vector<8x1xf32>
    %32 = vector.broadcast %31 : vector<8x1xf32> to vector<8x128xf32>
    %33 = arith.subf %22, %32 : vector<8x128xf32>
    %34 = vector.broadcast %29 : vector<8x1xf32> to vector<8x128xf32>
    %35 = arith.divf %27, %34 : vector<8x128xf32>
    %36 = tpu.iota {dimensions = array<i32: 1>} : vector<8x128xi32>
    %37 = vector.broadcast %24 : vector<8x1xf32> to vector<8x128xf32>
    %38 = arith.cmpf oeq, %22, %37 : vector<8x128xf32>
    %c128_i32 = arith.constant 128 : i32
    %39 = vector.broadcast %c128_i32 : i32 to vector<8x128xi32>
    %40 = arith.select %38, %36, %39 : vector<8x128xi1>, vector<8x128xi32>
    %cst_19 = arith.constant dense<2147483647> : vector<8xi32>
    %41 = vector.multi_reduction <minsi>, %40, %cst_19 [1] : vector<8x128xi32> to vector<8xi32>
    %42 = vector.shape_cast %41 : vector<8xi32> to vector<8x1xi32>
    %c0_20 = arith.constant 0 : index
    %c0_21 = arith.constant 0 : index
    %43 = vector.load %arg9[%c0_20, %c0_21] : memref<8x1xi32, #tpu.memory_space<vmem>>, vector<8x1xi32>
    tpu.vector_store %arg9[%c0_20, %c0_21], %42 {strides = array<i32>} : memref<8x1xi32, #tpu.memory_space<vmem>>, vector<8x1xi32>,
    %c0_22 = arith.constant 0 : index
    %c0_23 = arith.constant 0 : index
    %44 = vector.load %arg8[%c0_22, %c0_23] : memref<8x384xf32, #tpu.memory_space<vmem>>, vector<8x128xf32>
    tpu.vector_store %arg8[%c0_22, %c0_23], %22 {strides = array<i32>} : memref<8x384xf32, #tpu.memory_space<vmem>>, vector<8x128xf32>,
    %c0_24 = arith.constant 0 : index
    %c128 = arith.constant 128 : index
    %45 = vector.load %arg8[%c0_24, %c128] : memref<8x384xf32, #tpu.memory_space<vmem>>, vector<8x128xf32>
    tpu.vector_store %arg8[%c0_24, %c128], %33 {strides = array<i32>} : memref<8x384xf32, #tpu.memory_space<vmem>>, vector<8x128xf32>,
    %c0_25 = arith.constant 0 : index
    %c256 = arith.constant 256 : index
    %46 = vector.load %arg8[%c0_25, %c256] : memref<8x384xf32, #tpu.memory_space<vmem>>, vector<8x128xf32>
    tpu.vector_store %arg8[%c0_25, %c256], %35 {strides = array<i32>} : memref<8x384xf32, #tpu.memory_space<vmem>>, vector<8x128xf32>,
    return
  }
  func.func @transform_0(%arg0: i32) -> (i32, i32) {
    %c0_i32 = arith.constant 0 : i32
    %c0_i32_0 = arith.constant 0 : i32
    return %arg0, %c0_i32 : i32, i32
  }
  func.func @transform_1(%arg0: i32) -> (i32, i32) {
    %c0_i32 = arith.constant 0 : i32
    %c0_i32_0 = arith.constant 0 : i32
    %c0_i32_1 = arith.constant 0 : i32
    return %c0_i32, %c0_i32_0 : i32, i32
  }
  func.func @transform_2(%arg0: i32) -> (i32, i32) {
    %c0_i32 = arith.constant 0 : i32
    %c0_i32_0 = arith.constant 0 : i32
    %c0_i32_1 = arith.constant 0 : i32
    return %c0_i32, %c0_i32_0 : i32, i32
  }
  func.func @transform_3(%arg0: i32) -> (i32, i32) {
    %c0_i32 = arith.constant 0 : i32
    %c0_i32_0 = arith.constant 0 : i32
    %c0_i32_1 = arith.constant 0 : i32
    return %c0_i32, %c0_i32_0 : i32, i32
  }
  func.func @transform_4(%arg0: i32) -> (i32, i32) {
    %c0_i32 = arith.constant 0 : i32
    %c0_i32_0 = arith.constant 0 : i32
    %c0_i32_1 = arith.constant 0 : i32
    return %c0_i32, %c0_i32_0 : i32, i32
  }
  func.func @transform_5(%arg0: i32) -> (i32, i32) {
    %c0_i32 = arith.constant 0 : i32
    %c0_i32_0 = arith.constant 0 : i32
    %c0_i32_1 = arith.constant 0 : i32
    return %c0_i32, %c0_i32_0 : i32, i32
  }
  func.func @transform_6(%arg0: i32) -> (i32, i32) {
    %c0_i32 = arith.constant 0 : i32
    %c0_i32_0 = arith.constant 0 : i32
    %c0_i32_1 = arith.constant 0 : i32
    return %c0_i32, %c0_i32_0 : i32, i32
  }
  func.func @transform_7(%arg0: i32) -> (i32, i32) {
    %c0_i32 = arith.constant 0 : i32
    %c0_i32_0 = arith.constant 0 : i32
    return %arg0, %c0_i32 : i32, i32
  }
  func.func @transform_8(%arg0: i32) -> (i32, i32) {
    %c0_i32 = arith.constant 0 : i32
    %c0_i32_0 = arith.constant 0 : i32
    return %arg0, %c0_i32 : i32, i32
  }
}

</mosaic_0001>

<bundles_post_ra>
// kernel: tpu_custom_call.1
= control target key start
LH: loop header
LB: loop body
LE: loop exit
PB: predicated region body
PF: predicated region fallthrough
CT: control target
= control target key end

     0   :  { %14 = vsyncpa [#allocation3], 0  ;;  %s819_s0 = inlined_call_operand.hbm [shape: f32[8,16], index: 0, kind: input, shape index: {}]   ;;  %s820_s1 = inlined_call_operand.hbm [shape: bf16[16,128], index: 1, kind: input, shape index: {}]   ;;  %s821_s2 = inlined_call_operand.vmem [shape: f32[1,128], index: 2, kind: input, shape index: {}]   ;;  %s822_s3 = inlined_call_operand.hbm [shape: bf16[128,128], index: 3, kind: input, shape index: {}]   ;;  %s823_s4 = inlined_call_operand.vmem [shape: f32[1,128], index: 4, kind: input, shape index: {}]   ;;  %s824_s5 = inlined_call_operand.hbm [shape: bf16[128,128], index: 5, kind: input, shape index: {}]   ;;  %s825_s6 = inlined_call_operand.vmem [shape: f32[1,128], index: 6, kind: input, shape index: {}]   ;;  %s826_s7 = inlined_call_operand.hbm [shape: f32[8,384], index: 7, kind: output, shape index: {0}]   ;;  %s827_s8 = inlined_call_operand.vmem [shape: s32[8,1], index: 8, kind: output, shape index: {1}]  }
   0x1   :  { %15 = vsyncpa [#allocation6], 0 }
   0x2   :  { %16 = vsyncpa [#allocation9], 0 }
   0x3   :  { %17 = vsyncpa [#allocation4], 0  ;;  %s664_s27 = smov [#allocation5]   ;;  %s546_s9 = scalar_lea.hbm %s820_s1, 128 }
   0x4   :  { %s33_s28 = sshll.u32 %s664_s27, 4  ;;  %p547_p0 = scmp.ne.s32.totalorder %s820_s1, %s546_s9  ;;  %s34_s28 = int_to_ptr.vmem [resolvable:$true] %s33_s28 }
   0x5   :  { %p550_p1 = scmp.lt.u32.totalorder %s546_s9, %s820_s1 }
   0x7   :  { %p552_p2 = pnand %p550_p1, %p547_p0 }
   0x9   :  { %555 = shalt.err (!%p552_p2)
}
   0xa   :  { %s556_s14 = scalar_lea.vmem %s34_s28, 128  ;;  %p561_p4 = scmp.lt.s32.totalorder %s34_s28, %s34_s28 }
   0xb   :  { %p557_p3 = scmp.ne.s32.totalorder %s34_s28, %s556_s14  ;;  %p562_p5 = scmp.lt.s32.totalorder %s556_s14, %s556_s14 }
   0xd   :  { %p563_p6 = por %p562_p5, %p561_p4 }
   0xf   :  { %p564_p7 = pnand %p563_p6, %p557_p3 }
  0x11   :  { %567 = shalt.err (!%p564_p7)
}
  0x12   :  { %s665_s15 = smov 64   ;;  %s666_s16 = smov 4  }
  0x13   :  { %39 = dma.hbm_to_vmem [thread:$0]  %s820_s1, 128, %s34_s28, [#allocation6], %s665_s15, %s665_s15, %s666_s16  }
  0x14   :  { %s667_s19 = smov [#allocation2]   ;;  %s668_s21 = smov [#allocation7]  }
  0x15   :  { %s24_s20 = sshll.u32 %s667_s19, 4  ;;  %s47_s22 = sshll.u32 %s668_s21, 4  ;;  %s25_s20 = int_to_ptr.vmem [resolvable:$true] %s24_s20  ;;  %s48_s22 = int_to_ptr.vmem [resolvable:$true] %s47_s22 }
  0x16   :  { %s568_s25 = scalar_lea.hbm %s819_s0, 128 }
  0x17   :  { %p569_p8 = scmp.ne.s32.totalorder %s819_s0, %s568_s25  ;;  %p572_p9 = scmp.lt.u32.totalorder %s568_s25, %s819_s0 }
  0x19   :  { %p574_p10 = pnand %p572_p9, %p569_p8 }
  0x1b   :  { %577 = shalt.err (!%p574_p10)
}
  0x1c   :  { %s578_s1 = scalar_lea.vmem %s25_s20, 128  ;;  %p583_p12 = scmp.lt.s32.totalorder %s25_s20, %s25_s20 }
  0x1d   :  { %p579_p11 = scmp.ne.s32.totalorder %s25_s20, %s578_s1  ;;  %p584_p13 = scmp.lt.s32.totalorder %s578_s1, %s578_s1 }
  0x1f   :  { %p585_p0 = por %p584_p13, %p583_p12 }
  0x21   :  { %p586_p1 = pnand %p585_p0, %p579_p11 }
  0x23   :  { %589 = shalt.err (!%p586_p1)
}
  0x24   :  { %27 = dma.hbm_to_vmem [thread:$0]  %s819_s0, 128, %s25_s20, [#allocation3]  }
  0x25   :  { %s590_s12 = scalar_lea.hbm %s822_s3, 1024 }
  0x26   :  { %p591_p2 = scmp.ne.s32.totalorder %s822_s3, %s590_s12  ;;  %p594_p3 = scmp.lt.u32.totalorder %s590_s12, %s822_s3 }
  0x28   :  { %p596_p4 = pnand %p594_p3, %p591_p2 }
  0x2a   :  { %599 = shalt.err (!%p596_p4)
}
  0x2b   :  { %s600_s19 = scalar_lea.vmem %s48_s22, 1024  ;;  %p605_p6 = scmp.lt.s32.totalorder %s48_s22, %s48_s22 }
  0x2c   :  { %p601_p5 = scmp.ne.s32.totalorder %s48_s22, %s600_s19  ;;  %p606_p7 = scmp.lt.s32.totalorder %s600_s19, %s600_s19 }
  0x2e   :  { %p607_p8 = por %p606_p7, %p605_p6 }
  0x30   :  { %p608_p9 = pnand %p607_p8, %p601_p5 }
  0x32   :  { %611 = shalt.err (!%p608_p9)
}
  0x33   :  { %53 = dma.hbm_to_vmem [thread:$0]  %s822_s3, 1024, %s48_s22, [#allocation6], %s665_s15, %s665_s15, %s666_s16  }
  0x34   :  { %s669_s21 = smov [#allocation8]   ;;  %s612_s26 = scalar_lea.hbm %s824_s5, 1024 }
  0x35   :  { %s61_s23 = sshll.u32 %s669_s21, 4  ;;  %p613_p10 = scmp.ne.s32.totalorder %s824_s5, %s612_s26  ;;  %s62_s23 = int_to_ptr.vmem [resolvable:$true] %s61_s23 }
  0x36   :  { %p616_p11 = scmp.lt.u32.totalorder %s612_s26, %s824_s5 }
  0x38   :  { %p618_p12 = pnand %p616_p11, %p613_p10 }
  0x3a   :  { %621 = shalt.err (!%p618_p12)
}
  0x3b   :  { %s622_s28 = scalar_lea.vmem %s62_s23, 1024  ;;  %p627_p0 = scmp.lt.s32.totalorder %s62_s23, %s62_s23 }
  0x3c   :  { %p623_p13 = scmp.ne.s32.totalorder %s62_s23, %s622_s28  ;;  %p628_p1 = scmp.lt.s32.totalorder %s622_s28, %s622_s28 }
  0x3e   :  { %p629_p2 = por %p628_p1, %p627_p0 }
  0x40   :  { %p630_p3 = pnand %p629_p2, %p623_p13 }
  0x42   :  { %633 = shalt.err (!%p630_p3)
}
  0x43   :  { %67 = dma.hbm_to_vmem [thread:$0]  %s824_s5, 1024, %s62_s23, [#allocation9], %s665_s15, %s665_s15, %s666_s16  }
  0x44   :  { %656 = dma.done.wait [#allocation3], 128  }
  0x45   :  { %657 = vsyncadd [#allocation3], 4294967168 }
  0x46   :  { %658 = dma.done.wait [#allocation6], 1152  }
  0x47   :  { %659 = vsyncadd [#allocation6], 4294966144 }
  0x48   :  { %660 = dma.done.wait [#allocation9], 1024  }
  0x49   :  { %661 = vsyncadd [#allocation9], 4294966272  ;;  %v670_v0 = vmov 0.0   ;;  %vm671_vm0 = vmmov 0   ;;  %v523_v1 = vld [vmem:[#allocation5] sm:$0xff]   ;;  %v83_v2 = vld [vmem:[#allocation2] sm:$0xff]  ;;  %v383_v42 = vlaneseq }
  0x4a   :  { %468 = vmatprep.subr.bf16.mxu0 %v670_v0  ;;  %470 = vmatprep.mubr.msk.bf16.mxu0 %vm671_vm0, %v670_v0  ;;  %v84_v3 = vpack.c.bf16 %v83_v2, %v83_v2  ;;  %vm100_vm1 = vcmask 130048   ;;  %v524_v4 = vld [vmem:[#allocation7] sm:$0xff]   ;;  %v525_v5 = vld [vmem:[#allocation7 + $0x8] sm:$0xff]   ;;  %v526_v6 = vld [vmem:[#allocation7 + $0x10] sm:$0xff]  }
  0x4b   :  { %474 = vmatprep.subr.bf16.mxu1 %v670_v0  ;;  %490 = vmatprep.mubr.msk.bf16.mxu1 %vm671_vm0, %v670_v0  ;;  %v527_v7 = vld [vmem:[#allocation7 + $0x18] sm:$0xff]   ;;  %v528_v8 = vld [vmem:[#allocation7 + $0x20] sm:$0xff]   ;;  %v529_v9 = vld [vmem:[#allocation7 + $0x28] sm:$0xff]   ;;  %v384_v43 = vand.u32 127, %v383_v42 }
  0x4c   :  { %469 = vmatpush3.bf16.msra.mxu0 %v523_v1  ;;  %475 = vmatpush3.bf16.msra.mxu1 %v524_v4  ;;  %v530_v10 = vld [vmem:[#allocation7 + $0x30] sm:$0xff]   ;;  %v531_v11 = vld [vmem:[#allocation7 + $0x38] sm:$0xff]   ;;  %v532_v12 = vld [vmem:[#allocation8] sm:$0xff]  }
  0x4d   :  { %494 = vmatprep.subr.bf16.mxu0 %v670_v0  ;;  %476 = vmatprep.subr.bf16.mxu1 %v670_v0  ;;  %v533_v13 = vld [vmem:[#allocation8 + $0x8] sm:$0xff]   ;;  %v534_v14 = vld [vmem:[#allocation8 + $0x10] sm:$0xff]   ;;  %v535_v15 = vld [vmem:[#allocation8 + $0x18] sm:$0xff]  }
  0x4e   :  { %v536_v16 = vld [vmem:[#allocation8 + $0x20] sm:$0xff]   ;;  %v537_v17 = vld [vmem:[#allocation8 + $0x28] sm:$0xff]   ;;  %v427_v18 = vld [vmem:[%s821_s2] ss:$0 sm:$0xff] }
  0x4f   :  { %471 = vmatmul.mubr.msk.bf16.vlgmr.msra.gmra.mrb[0].mxu0 %vm100_vm1, %v84_v3  ;;  %v538_v26 = vld [vmem:[#allocation8 + $0x30] sm:$0xff]   ;;  %v539_v27 = vld [vmem:[#allocation8 + $0x38] sm:$0xff]  }
  0x50   :  { %510 = vmatprep.mubr.msk.bf16.mxu0 %vm671_vm0, %v670_v0  ;;  %477 = vmatpush3.bf16.msra.mxu1 %v525_v5  ;;  %v430_v28 = vld [vmem:[%s823_s4] ss:$0 sm:$0xff]  ;;  %s672_s4 = smov [#allocation10]  }
  0x51   :  { %478 = vmatprep.subr.bf16.mxu1 %v670_v0  ;;  %495 = vmatpush3.bf16.msra.mxu0 %v532_v12  ;;  %v439_v36 = vld [vmem:[%s825_s6] ss:$0 sm:$0xff]  ;;  %s412_s6 = sshll.u32 %s672_s4, 4  ;;  %s413_s6 = int_to_ptr.vmem [resolvable:$true] %s412_s6 }
  0x52   :  { %496 = vmatprep.subr.bf16.mxu0 %v670_v0  ;;  %s634_s11 = scalar_lea.vmem %s413_s6, 384  ;;  %p639_p5 = scmp.lt.s32.totalorder %s413_s6, %s413_s6 }
  0x53   :  { %p635_p4 = scmp.ne.s32.totalorder %s413_s6, %s634_s11  ;;  %p640_p6 = scmp.lt.s32.totalorder %s634_s11, %s634_s11 }
  0x54   :  { %479 = vmatpush3.bf16.msra.mxu1 %v526_v6 }
  0x55   :  { %480 = vmatprep.subr.bf16.mxu1 %v670_v0  ;;  %497 = vmatpush3.bf16.msra.mxu0 %v533_v13  ;;  %p641_p7 = por %p640_p6, %p639_p5 }
  0x56   :  { %498 = vmatprep.subr.bf16.mxu0 %v670_v0 }
  0x57   :  { %p642_p8 = pnand %p641_p7, %p635_p4 }
  0x58   :  { %481 = vmatpush3.bf16.msra.mxu1 %v527_v7 }
  0x59   :  { %482 = vmatprep.subr.bf16.mxu1 %v670_v0  ;;  %499 = vmatpush3.bf16.msra.mxu0 %v534_v14 }
  0x5a   :  { %500 = vmatprep.subr.bf16.mxu0 %v670_v0 }
  0x5c   :  { %483 = vmatpush3.bf16.msra.mxu1 %v528_v8 }
  0x5d   :  { %484 = vmatprep.subr.bf16.mxu1 %v670_v0  ;;  %501 = vmatpush3.bf16.msra.mxu0 %v535_v15 }
  0x5e   :  { %502 = vmatprep.subr.bf16.mxu0 %v670_v0 }
  0x60   :  { %485 = vmatpush3.bf16.msra.mxu1 %v529_v9 }
  0x61   :  { %486 = vmatprep.subr.bf16.mxu1 %v670_v0  ;;  %503 = vmatpush3.bf16.msra.mxu0 %v536_v16 }
  0x62   :  { %504 = vmatprep.subr.bf16.mxu0 %v670_v0 }
  0x64   :  { %487 = vmatpush3.bf16.msra.mxu1 %v530_v10 }
  0x65   :  { %488 = vmatprep.subr.bf16.mxu1 %v670_v0  ;;  %505 = vmatpush3.bf16.msra.mxu0 %v537_v17 }
  0x66   :  { %506 = vmatprep.subr.bf16.mxu0 %v670_v0 }
  0x68   :  { %489 = vmatpush3.bf16.msra.mxu1 %v531_v11 }
  0x69   :  { %507 = vmatpush3.bf16.msra.mxu0 %v538_v26 }
  0x6a   :  { %508 = vmatprep.subr.bf16.mxu0 %v670_v0 }
  0x6d   :  { %509 = vmatpush3.bf16.msra.mxu0 %v539_v27 }
 0x122   :  { %v138_v19 = vpop.f32.mrb[0].mxu0 }
 0x123   :  { %v139_v20 = vadd.f32 %v427_v18, %v138_v19  ;;  %v472_v21 = vpop.f32.mrb[1].mxu0 }
 0x124   :  { %v141_v22 = vpop.f32.mrb[2].mxu0 }
 0x125   :  { %v144_v23 = vmax.f32 %v139_v20, 0.0  ;;  %v473_v24 = vpop.f32.mrb[3].mxu0 }
 0x127   :  { %v145_v25 = vpack.c.bf16 %v144_v23, %v144_v23 }
 0x129   :  { %491 = vmatmul.mubr.bf16.vlgmr.msra.gmra.mrb[0].mxu1 %v145_v25 }
 0x1fc   :  { %v251_v29 = vpop.f32.mrb[0].mxu1 }
 0x1fd   :  { %v252_v30 = vadd.f32 %v430_v28, %v251_v29  ;;  %v492_v31 = vpop.f32.mrb[1].mxu1 }
 0x1fe   :  { %v254_v32 = vpop.f32.mrb[2].mxu1 }
 0x1ff   :  { %v257_v33 = vmax.f32 %v252_v30, 0.0  ;;  %v493_v34 = vpop.f32.mrb[3].mxu1 }
 0x201   :  { %v258_v35 = vpack.c.bf16 %v257_v33, %v257_v33 }
 0x203   :  { %511 = vmatmul.mubr.bf16.vlgmr.msra.gmra.mrb[4].mxu0 %v258_v35 }
 0x2d6   :  { %v364_v37 = vpop.f32.mrb[4].mxu0 }
 0x2d7   :  { %v365_v38 = vadd.f32 %v439_v36, %v364_v37  ;;  %v512_v39 = vpop.f32.mrb[5].mxu0 }
 0x2d8   :  { %v367_v40 = vpop.f32.mrb[6].mxu0 }
 0x2d9   :  { %403 = vst [vmem:[#allocation10] sm:$0xff] %v365_v38  ;;  %370 = vmax.xlane.f32.xlu0 %v365_v38  ;;  %v513_v41 = vpop.f32.mrb[7].mxu0 }
 0x366   :  { %v371_v44 = vpop.xlane.xlu0 %370 }
 0x367   :  { %v372_v45 = vsub.f32 %v365_v38, %v371_v44  ;;  %vm385_vm2 = vcmp.eq.f32.partialorder %v365_v38, %v371_v44 }
 0x368   :  { %v386_v46 = vsel %vm385_vm2, %v384_v43, 128 }
 0x369   :  { %v373_v47 = vmul.f32 1.442695, %v372_v45  ;;  %v388_v48 = vshra.s32 %v386_v46, 16  ;;  %v387_v51 = vand.u32 65535, %v386_v46 }
 0x36b   :  { %540 = vpow2.f32 %v373_v47  ;;  %v390_v49 = vcvt.s32.f32 %v388_v48  ;;  %v389_v53 = vcvt.s32.f32 %v387_v51 }
 0x36d   :  { %391 = vmin.xlane.f32.xlu0 %v390_v49 }
 0x375   :  { %v541_v50 = vpop.eup %540 }
 0x376   :  { %375 = vadd.xlane.f32.xlu1 %v541_v50 }
 0x3fa   :  { %v392_v52 = vpop.xlane.xlu0 %391 }
 0x3fb   :  { %vm393_vm3 = vcmp.eq.f32.partialorder %v390_v49, %v392_v52 }
 0x3fc   :  { %v394_v54 = vsel %vm393_vm3, %v389_v53, inf }
 0x3fd   :  { %395 = vmin.xlane.f32.xlu1 %v394_v54 }
 0x403   :  { %v376_v55 = vpop.xlane.xlu1 %375 }
 0x404   :  { %542 = vlog2.f32 %v376_v55 }
 0x405   :  { %544 = vrcp.f32 %v376_v55 }
 0x40e   :  { %v543_v56 = vpop.eup %542 }
 0x40f   :  { %v545_v57 = vpop.eup %544  ;;  %v378_v58 = vmul.f32 0.6931472, %v543_v56 }
 0x410   :  { %v382_v59 = vmul.f32 %v545_v57, %v541_v50 }
 0x411   :  { %v379_v60 = vadd.f32 %v378_v58, %v371_v44 }
 0x412   :  { %405 = vst [vmem:[#allocation10 + $0x10] sm:$0xff] %v382_v59 }
 0x413   :  { %v380_v61 = vsub.f32 %v365_v38, %v379_v60 }
 0x415   :  { %404 = vst [vmem:[#allocation10 + $0x8] sm:$0xff] %v380_v61 }
 0x416   :  { %645 = shalt.err (!%p642_p8)
}
 0x417   :  { %s646_s14 = scalar_lea.hbm %s826_s7, 384 }
 0x418   :  { %p647_p9 = scmp.ne.s32.totalorder %s826_s7, %s646_s14  ;;  %p650_p10 = scmp.lt.u32.totalorder %s646_s14, %s826_s7 }
 0x41a   :  { %p652_p11 = pnand %p650_p10, %p647_p9 }
 0x41c   :  { %655 = shalt.err (!%p652_p11)
}
 0x41d   :  { %415 = dma.vmem_to_hbm [thread:$0]  %s413_s6, 384, %s826_s7, [#allocation4]   ;;  %v398_v62 = vcvt.f32.s32 %v392_v52  ;;  %vm401_vm4 = vcmask 7168  }
 0x41f   :  { %v399_v0 = vshll.u32 %v398_v62, 16 }
 0x48a   :  { %v396_v63 = vpop.xlane.xlu1 %395 }
 0x48b   :  { %v397_v1 = vcvt.f32.s32 %v396_v63 }
 0x48d   :  { %v400_v2 = vadd.s32 %v399_v0, %v397_v1 }
 0x48f   :  { %402 = vst.msk [vmem:[%s827_s8] sm:$0xff] %vm401_vm4, %v400_v2 }
 0x490   :  { %662 = dma.done.wait [#allocation4], 384  }
 0x491   :  { %663 = vsyncadd [#allocation4], 4294966912 }
 0x492   :  { %423 = vsyncpa [#allocation3], 1 }
 0x493   :  { %424 = vsyncpa [#allocation6], 1 }
 0x494   :  { %425 = vsyncpa [#allocation9], 1 }
 0x495   :  { %426 = vsyncpa [#allocation4], 1 }

</bundles_post_ra>
